<compile_context>
chip_gen: v6e
topology: v6e:2x2x1
jax: 0.10.0
libtpu: 0.0.40
codegen_flags: <defaults>
</compile_context>

<pallas_src>
import jax
import jax.numpy as jnp
from jax.experimental import pallas as pl
from jax.experimental.pallas import tpu as pltpu


_LANES = 128
_MAX_BLOCK_ROWS = 1024  # (2, 1024, 128) f32 block = 1 MiB per pipeline buffer.


def _pinn_loss_kernel(inv_total_ref, x_ref, o_ref, acc_ref):
    # x_ref block: (2, block_rows, 128) f32; x_ref[0]=prediction, x_ref[1]=h_data.
    i = pl.program_id(0)

    @pl.when(i == 0)
    def _init():
        acc_ref[0] = jnp.float32(0.0)

    d = x_ref[0] - x_ref[1]                 # VPU elementwise
    acc_ref[0] += jnp.sum(d * d)            # XLU cross-lane/sublane reduce

    @pl.when(i == pl.num_programs(0) - 1)
    def _finalize():
        # multiply by precomputed 1/total (runtime SMEM scalar, no divide)
        o_ref[0] = acc_ref[0] * inv_total_ref[0]


def pinn_loss(prediction, h_data, total):
    """MSE-style PINN data loss: sum((prediction - h_data)^2) / total."""
    n = prediction.shape[0]
    assert h_data.shape[0] == n

    # Lane-dense layout: flatten to (rows, 128), rows a multiple of 8 and of
    # the block row count so the grid tiles evenly.
    rows = max(8, -(-n // _LANES))
    rows = -(-rows // 8) * 8
    block_rows = min(rows, _MAX_BLOCK_ROWS)
    rows = -(-rows // block_rows) * block_rows
    padded = rows * _LANES
    num_blocks = rows // block_rows

    # Single packed input; zero pads are identical in both operands, so the
    # padded region contributes exactly 0 to the squared-error sum.
    x = jnp.stack([prediction.astype(jnp.float32), h_data.astype(jnp.float32)])
    x = jnp.pad(x, ((0, 0), (0, padded - n))).reshape(2, rows, _LANES)

    inv_total = jnp.asarray([1.0 / float(total)], dtype=jnp.float32)

    out = pl.pallas_call(
        _pinn_loss_kernel,
        out_shape=jax.ShapeDtypeStruct((1,), jnp.float32),
        grid_spec=pltpu.PrefetchScalarGridSpec(
            num_scalar_prefetch=0,
            grid=(num_blocks,),
            in_specs=[
                pl.BlockSpec(memory_space=pltpu.SMEM),                    # 1/total
                pl.BlockSpec((2, block_rows, _LANES), lambda i: (0, i, 0)),  # packed data
            ],
            out_specs=pl.BlockSpec(memory_space=pltpu.SMEM),              # (1,) scalar
            scratch_shapes=[pltpu.SMEM((1,), jnp.float32)],               # accumulator
        ),
        compiler_params=pltpu.CompilerParams(
            dimension_semantics=("arbitrary",),   # carried accumulator -> reduction axis
        ),
    )(inv_total, x)
    return out[0]


if __name__ == "__main__":
    # Small shapes consistent with the module:
    #   t_num = 40 time samples, x_num = 1  ->  total = 40
    #   choose = 15 selected data points.
    choose = 15
    t_num = 40
    x_num = 1
    total = x_num * t_num

    key = jax.random.PRNGKey(0)
    k_pred, k_h = jax.random.split(key)

    # Deterministic synthetic "exact solution" samples and a prediction.
    h_data_choose = jax.random.normal(k_h, (choose,), dtype=jnp.float32)
    prediction = jax.random.normal(k_pred, (choose,), dtype=jnp.float32)

    loss = pinn_loss(prediction, h_data_choose, total)
    loss = jax.block_until_ready(loss)

    # Reference check (plain JAX, mirrors the PyTorch forward exactly).
    ref = jnp.sum((prediction - h_data_choose) ** 2) / total
    assert jnp.allclose(loss, ref, rtol=1e-6, atol=1e-6), (loss, ref)

    print("KERNEL_OK")
</pallas_src>

<mosaic_0001>
module attributes {stable_mosaic.version = 11 : i64} {
  func.func @_pinn_loss_kernel(%arg0: i32, %arg1: memref<1xf32, #tpu.memory_space<smem>>, %arg2: memref<2x8x128xf32, #tpu.memory_space<vmem>>, %arg3: memref<1xf32, #tpu.memory_space<smem>>, %arg4: memref<1xf32, #tpu.memory_space<smem>>) attributes {dimension_semantics = [#tpu.dimension_semantics<arbitrary>], iteration_bounds = array<i64: 1>, scalar_prefetch = 0 : i64, scratch_operands = 1 : i64, tpu.core_type = #tpu.core_type<tc>, window_params = [{transform_indices = @transform_0, window_bounds = array<i64: 1>}, {transform_indices = @transform_1, window_bounds = array<i64: 2, 8, 128>}, {transform_indices = @transform_2, window_bounds = array<i64: 1>}]} {
    %c0_i32 = arith.constant 0 : i32
    %0 = arith.cmpi eq, %arg0, %c0_i32 : i32
    %1 = arith.extui %0 : i1 to i32
    %c0_i32_0 = arith.constant 0 : i32
    %2 = arith.cmpi ne, %1, %c0_i32_0 : i32
    scf.if %2 {
      %cst_9 = arith.constant 0.000000e+00 : f32
      %c0_10 = arith.constant 0 : index
      %19 = memref.load %arg4[%c0_10] : memref<1xf32, #tpu.memory_space<smem>>
      memref.store %cst_9, %arg4[%c0_10] : memref<1xf32, #tpu.memory_space<smem>>
    } else {
    }
    %c0 = arith.constant 0 : index
    %c0_1 = arith.constant 0 : index
    %c0_2 = arith.constant 0 : index
    %3 = vector.load %arg2[%c0, %c0_1, %c0_2] : memref<2x8x128xf32, #tpu.memory_space<vmem>>, vector<1x8x128xf32>
    %4 = vector.shape_cast %3 : vector<1x8x128xf32> to vector<8x128xf32>
    %c1 = arith.constant 1 : index
    %c0_3 = arith.constant 0 : index
    %c0_4 = arith.constant 0 : index
    %5 = vector.load %arg2[%c1, %c0_3, %c0_4] : memref<2x8x128xf32, #tpu.memory_space<vmem>>, vector<1x8x128xf32>
    %6 = vector.shape_cast %5 : vector<1x8x128xf32> to vector<8x128xf32>
    %7 = arith.subf %4, %6 : vector<8x128xf32>
    %c0_5 = arith.constant 0 : index
    %8 = memref.load %arg4[%c0_5] : memref<1xf32, #tpu.memory_space<smem>>
    %9 = arith.mulf %7, %7 : vector<8x128xf32>
    %10 = vector.shape_cast %9 : vector<8x128xf32> to vector<1x8x128xf32>
    %cst = arith.constant dense<0.000000e+00> : vector<1xf32>
    %11 = vector.multi_reduction <add>, %10, %cst [1, 2] : vector<1x8x128xf32> to vector<1xf32>
    %12 = vector.shape_cast %11 : vector<1xf32> to vector<1x1x1xf32>
    %13 = vector.extract %12[0, 0, 0] : f32 from vector<1x1x1xf32>
    %14 = arith.addf %8, %13 : f32
    %c0_6 = arith.constant 0 : index
    %15 = memref.load %arg4[%c0_6] : memref<1xf32, #tpu.memory_space<smem>>
    memref.store %14, %arg4[%c0_6] : memref<1xf32, #tpu.memory_space<smem>>
    %c0_i32_7 = arith.constant 0 : i32
    %16 = arith.cmpi eq, %arg0, %c0_i32_7 : i32
    %17 = arith.extui %16 : i1 to i32
    %c0_i32_8 = arith.constant 0 : i32
    %18 = arith.cmpi ne, %17, %c0_i32_8 : i32
    scf.if %18 {
      %c0_9 = arith.constant 0 : index
      %19 = memref.load %arg4[%c0_9] : memref<1xf32, #tpu.memory_space<smem>>
      %c0_10 = arith.constant 0 : index
      %20 = memref.load %arg1[%c0_10] : memref<1xf32, #tpu.memory_space<smem>>
      %21 = arith.mulf %19, %20 : f32
      %c0_11 = arith.constant 0 : index
      %22 = memref.load %arg3[%c0_11] : memref<1xf32, #tpu.memory_space<smem>>
      memref.store %21, %arg3[%c0_11] : memref<1xf32, #tpu.memory_space<smem>>
    } else {
    }
    return
  }
  func.func @transform_0(%arg0: i32) -> i32 {
    %c0_i32 = arith.constant 0 : i32
    %c0_i32_0 = arith.constant 0 : i32
    return %c0_i32 : i32
  }
  func.func @transform_1(%arg0: i32) -> (i32, i32, i32) {
    %c0_i32 = arith.constant 0 : i32
    %c0_i32_0 = arith.constant 0 : i32
    %c0_i32_1 = arith.constant 0 : i32
    return %c0_i32, %arg0, %c0_i32_0 : i32, i32, i32
  }
  func.func @transform_2(%arg0: i32) -> i32 {
    %c0_i32 = arith.constant 0 : i32
    %c0_i32_0 = arith.constant 0 : i32
    return %c0_i32 : i32
  }
}

</mosaic_0001>

<bundles_post_ra>
// kernel: tpu_custom_call.1
= control target key start
LH: loop header
LB: loop body
LE: loop exit
PB: predicated region body
PF: predicated region fallthrough
CT: control target
= control target key end

     0   :  { %8 = vsyncpa [#allocation5], 0  ;;  %s139_s0 = inlined_call_operand.<no memory space> [shape: f32[1], index: 0, kind: input, shape index: {}]   ;;  %s140_s1 = inlined_call_operand.hbm [shape: f32[2,8,128], index: 1, kind: input, shape index: {}]   ;;  %s141_s2 = inlined_call_operand.hbm [shape: f32[1], index: 2, kind: output, shape index: {}]  }
   0x1   :  { %9 = vsyncpa [#allocation6], 0  ;;  %s111_s9 = smov [#allocation4]  }
   0x2   :  { %s17_s10 = sshll.u32 %s111_s9, 4  ;;  %s18_s10 = int_to_ptr.vmem [resolvable:$true] %s17_s10 }
   0x3   :  { %s87_s11 = scalar_lea.vmem %s18_s10, 256  ;;  %p92_p1 = scmp.lt.s32.totalorder %s18_s10, %s18_s10 }
   0x4   :  { %p88_p0 = scmp.ne.s32.totalorder %s18_s10, %s87_s11  ;;  %p93_p2 = scmp.lt.s32.totalorder %s87_s11, %s87_s11 }
   0x6   :  { %p94_p3 = por %p93_p2, %p92_p1 }
   0x8   :  { %p95_p4 = pnand %p94_p3, %p88_p0 }
   0xa   :  { %98 = shalt.err (!%p95_p4)
}
   0xb   :  { %s112_s12 = smov 128   ;;  %s113_s13 = smov 8  }
   0xc   :  { %23 = dma.hbm_to_vmem [thread:$0]  %s140_s1, 256, %s18_s10, [#allocation5], %s112_s12, %s112_s12, %s113_s13  }
   0xd   :  { %107 = dma.done.wait [#allocation5], 256  }
   0xe   :  { %108 = vsyncadd [#allocation5], 4294967040  ;;  %v33_v0 = vld [vmem:[#allocation4] sm:$0xff]  ;;  %v35_v1 = vld [vmem:[#allocation4 + $0x8] sm:$0xff]  ;;  %s114_s19 = smov [#allocation7]  }
   0xf   :  { %v36_v2 = vsub.f32 %v33_v0, %v35_v1 }
  0x11   :  { %v38_v3 = vmul.f32 %v36_v2, %v36_v2 }
  0x13   :  { %39 = vadd.xlane.f32.xlu0 %v38_v3 }
  0x9c   :  { %v40_v4 = vpop.xlane.xlu0 %39 }
  0x9d   :  { %v41_v5 = vrot.slane %v40_v4, 4 }
  0x9f   :  { %v42_v6 = vadd.f32 %v41_v5, %v40_v4 }
  0xa1   :  { %v43_v7 = vrot.slane %v42_v6, 2 }
  0xa3   :  { %v44_v8 = vadd.f32 %v43_v7, %v42_v6 }
  0xa5   :  { %v45_v9 = vrot.slane %v44_v8, 1 }
  0xa7   :  { %v46_v10 = vadd.f32 %v45_v9, %v44_v8 }
  0xa9   :  { %73 = vpush %v46_v10 }
  0xda   :  { %s74_s16 = spop %73 }
  0xdb   :  { %s56_s1 = smul.f32 %s74_s16, %s139_s0 }
  0xdd   :  { %58 = sst [smem:[#allocation7]] %s56_s1 }
  0xde   :  { %66 = dma.smem_to_hbm %s114_s19, 16, %s141_s2, [#allocation6]  }
  0xdf   :  { %109 = dma.done.wait [#allocation6], 16  }
  0xe0   :  { %110 = vsyncadd [#allocation6], 4294967280 }
  0xe1   :  { %70 = sfence }
  0xe2   :  { %71 = vsyncpa [#allocation5], 1 }
  0xe3   :  { %72 = vsyncpa [#allocation6], 1 }

</bundles_post_ra>
